<compile_context>
chip_gen: v5e
topology: v5e:2x2
jax: 0.10.0
libtpu: 0.0.40
codegen_flags: <defaults>
</compile_context>

<pallas_src>
import jax
import jax.numpy as jnp
from jax.experimental import pallas as pl
from jax.experimental.pallas import tpu as pltpu

INPUT_SIZE = 70
H1 = 250
H2 = 100
OUT = 4

# Lane-aligned (multiple-of-128 last dim) padded sizes.
F_IN_P = 128   # 70  -> 128
H1_P = 256     # 250 -> 256
H2_P = 128     # 100 -> 128
OUT_P = 128    # 4   -> 128


def _round_up(n, m):
    return (n + m - 1) // m * m


def mlp_kernel(x_ref, w1_ref, b1_ref, w2_ref, b2_ref, w3_ref, b3_ref, o_ref):
    """Fused relu(relu(x@W1+b1)@W2+b2)@W3+b3 on one (TB, 128) batch tile.

    MXU inputs are bf16, accumulation is f32 (preferred_element_type), and the
    elementwise bias-add + ReLU run in f32 on the VPU.
    """
    x = x_ref[...]                                                     # bf16 (TB, 128)
    h1 = jnp.dot(x, w1_ref[...], preferred_element_type=jnp.float32)  # f32 (TB, 256)
    h1 = jnp.maximum(h1 + b1_ref[...], 0.0)
    h2 = jnp.dot(h1.astype(jnp.bfloat16), w2_ref[...],
                 preferred_element_type=jnp.float32)                   # f32 (TB, 128)
    h2 = jnp.maximum(h2 + b2_ref[...], 0.0)
    h3 = jnp.dot(h2.astype(jnp.bfloat16), w3_ref[...],
                 preferred_element_type=jnp.float32)                   # f32 (TB, 128)
    o_ref[...] = (h3 + b3_ref[...]).astype(o_ref.dtype)                # lane-dense store


def prepare_params(params):
    """Zero-pad feature dims to 128-lane multiples; cast weights to bf16.

    Done once outside the kernel so the per-call path only streams the batch.
    """
    w1, b1, w2, b2, w3, b3 = params

    def pad2(a, rows, cols):
        return jnp.pad(a, ((0, rows - a.shape[0]), (0, cols - a.shape[1])))

    w1p = pad2(w1, F_IN_P, H1_P).astype(jnp.bfloat16)
    w2p = pad2(w2, H1_P, H2_P).astype(jnp.bfloat16)
    w3p = pad2(w3, H2_P, OUT_P).astype(jnp.bfloat16)
    b1p = pad2(b1, 1, H1_P)   # biases stay f32 (tiny; keeps VPU epilogue in f32)
    b2p = pad2(b2, 1, H2_P)
    b3p = pad2(b3, 1, OUT_P)
    return (w1p, b1p, w2p, b2p, w3p, b3p)


def mlp_forward(x, prepared_params, *, tb=256):
    w1p, b1p, w2p, b2p, w3p, b3p = prepared_params
    B, f_in = x.shape

    # Batch tile: multiple of 8 sublanes, no bigger than the (rounded) batch.
    tb = min(tb, _round_up(B, 8))
    b_pad = _round_up(B, tb)
    grid = (b_pad // tb,)

    # Pad batch to the grid and features to the 128-lane layout; cast to bf16
    # so the first matmul takes the native MXU bf16 path.
    xp = jnp.pad(x, ((0, b_pad - B), (0, F_IN_P - f_in))).astype(jnp.bfloat16)

    # Weights/biases: full-array blocks with a constant block index -> DMA'd
    # once and kept VMEM-resident across all batch tiles.
    resident = lambda a: pl.BlockSpec(a.shape, lambda i: (0, 0))

    out = pl.pallas_call(
        mlp_kernel,
        out_shape=jax.ShapeDtypeStruct((b_pad, OUT_P), jnp.float32),
        grid_spec=pltpu.PrefetchScalarGridSpec(
            num_scalar_prefetch=0,
            grid=grid,
            in_specs=[
                pl.BlockSpec((tb, F_IN_P), lambda i: (i, 0)),   # x: pipelined per tile
                resident(w1p), resident(b1p),
                resident(w2p), resident(b2p),
                resident(w3p), resident(b3p),
            ],
            out_specs=pl.BlockSpec((tb, OUT_P), lambda i: (i, 0)),
        ),
        compiler_params=pltpu.CompilerParams(
            dimension_semantics=("parallel",)),  # shards batch tiles over v7x's 2 TCs
    )(xp, w1p, b1p, w2p, b2p, w3p, b3p)

    return out[:B, :OUT]


def init_params(key):
    # PyTorch nn.Linear default init: U(-1/sqrt(fan_in), +1/sqrt(fan_in)).
    def linear(key, fan_in, fan_out):
        kw, kb = jax.random.split(key)
        bound = 1.0 / jnp.sqrt(fan_in)
        w = jax.random.uniform(kw, (fan_in, fan_out), jnp.float32, -bound, bound)
        b = jax.random.uniform(kb, (fan_out,), jnp.float32, -bound, bound)
        return w, b.reshape(1, fan_out)

    k1, k2, k3 = jax.random.split(key, 3)
    w1, b1 = linear(k1, INPUT_SIZE, H1)
    w2, b2 = linear(k2, H1, H2)
    w3, b3 = linear(k3, H2, OUT)
    return (w1, b1, w2, b2, w3, b3)


def mlp_reference(x, params):
    w1, b1, w2, b2, w3, b3 = params
    h = jnp.maximum(x @ w1 + b1, 0.0)
    h = jnp.maximum(h @ w2 + b2, 0.0)
    return h @ w3 + b3


if __name__ == "__main__":
    key = jax.random.PRNGKey(0)
    kx, kp = jax.random.split(key)
    B = 64
    x = jax.random.normal(kx, (B, INPUT_SIZE), jnp.float32)

    params = init_params(kp)
    prepared = prepare_params(params)          # pad + bf16-cast once, outside the call

    fwd = jax.jit(mlp_forward)
    out = jax.block_until_ready(fwd(x, prepared))

    ref = mlp_reference(x, params)             # pure-f32 reference
    assert out.shape == (B, OUT)
    # bf16 matmul inputs (f32 accumulation) => loosened tolerance vs f32 reference.
    assert jnp.allclose(out, ref, atol=5e-2, rtol=5e-2), "mismatch vs reference"
    print("KERNEL_OK")
</pallas_src>

<mosaic_0001>
module attributes {stable_mosaic.version = 11 : i64} {
  func.func @mlp_kernel(%arg0: i32, %arg1: memref<64x128xbf16, #tpu.memory_space<vmem>>, %arg2: memref<128x256xbf16, #tpu.memory_space<vmem>>, %arg3: memref<1x256xf32, #tpu.memory_space<vmem>>, %arg4: memref<256x128xbf16, #tpu.memory_space<vmem>>, %arg5: memref<1x128xf32, #tpu.memory_space<vmem>>, %arg6: memref<128x128xbf16, #tpu.memory_space<vmem>>, %arg7: memref<1x128xf32, #tpu.memory_space<vmem>>, %arg8: memref<64x128xf32, #tpu.memory_space<vmem>>) attributes {dimension_semantics = [#tpu.dimension_semantics<parallel>], iteration_bounds = array<i64: 1>, scalar_prefetch = 0 : i64, scratch_operands = 0 : i64, tpu.core_type = #tpu.core_type<tc>, window_params = [{transform_indices = @transform_0, window_bounds = array<i64: 64, 128>}, {pipeline_mode = #tpu.pipeline_mode<synchronous>, transform_indices = @transform_1, window_bounds = array<i64: 128, 256>}, {pipeline_mode = #tpu.pipeline_mode<synchronous>, transform_indices = @transform_2, window_bounds = array<i64: 1, 256>}, {pipeline_mode = #tpu.pipeline_mode<synchronous>, transform_indices = @transform_3, window_bounds = array<i64: 256, 128>}, {pipeline_mode = #tpu.pipeline_mode<synchronous>, transform_indices = @transform_4, window_bounds = array<i64: 1, 128>}, {pipeline_mode = #tpu.pipeline_mode<synchronous>, transform_indices = @transform_5, window_bounds = array<i64: 128, 128>}, {pipeline_mode = #tpu.pipeline_mode<synchronous>, transform_indices = @transform_6, window_bounds = array<i64: 1, 128>}, {transform_indices = @transform_7, window_bounds = array<i64: 64, 128>}]} {
    %c0 = arith.constant 0 : index
    %c0_0 = arith.constant 0 : index
    %0 = vector.load %arg1[%c0, %c0_0] : memref<64x128xbf16, #tpu.memory_space<vmem>>, vector<64x128xbf16>
    %c0_1 = arith.constant 0 : index
    %c0_2 = arith.constant 0 : index
    %1 = vector.load %arg2[%c0_1, %c0_2] : memref<128x256xbf16, #tpu.memory_space<vmem>>, vector<128x256xbf16>
    %cst = arith.constant dense<0.000000e+00> : vector<64x256xf32>
    %2 = tpu.matmul %0, %1, %cst {dimension_numbers = #tpu.dot_dimension_numbers<[1], [0], [0], [1], [0, 0, 1, 1], [], []>} : vector<64x128xbf16>, vector<128x256xbf16>, vector<64x256xf32> -> vector<64x256xf32>
    %c0_3 = arith.constant 0 : index
    %c0_4 = arith.constant 0 : index
    %3 = vector.load %arg3[%c0_3, %c0_4] : memref<1x256xf32, #tpu.memory_space<vmem>>, vector<1x256xf32>
    %4 = vector.broadcast %3 : vector<1x256xf32> to vector<64x256xf32>
    %5 = arith.addf %2, %4 : vector<64x256xf32>
    %cst_5 = arith.constant 0.000000e+00 : f32
    %6 = vector.broadcast %cst_5 : f32 to vector<64x256xf32>
    %7 = arith.maximumf %5, %6 : vector<64x256xf32>
    %8 = arith.truncf %7 : vector<64x256xf32> to vector<64x256xbf16>
    %c0_6 = arith.constant 0 : index
    %c0_7 = arith.constant 0 : index
    %9 = vector.load %arg4[%c0_6, %c0_7] : memref<256x128xbf16, #tpu.memory_space<vmem>>, vector<256x128xbf16>
    %cst_8 = arith.constant dense<0.000000e+00> : vector<64x128xf32>
    %10 = tpu.matmul %8, %9, %cst_8 {dimension_numbers = #tpu.dot_dimension_numbers<[1], [0], [0], [1], [0, 0, 1, 1], [], []>} : vector<64x256xbf16>, vector<256x128xbf16>, vector<64x128xf32> -> vector<64x128xf32>
    %c0_9 = arith.constant 0 : index
    %c0_10 = arith.constant 0 : index
    %11 = vector.load %arg5[%c0_9, %c0_10] : memref<1x128xf32, #tpu.memory_space<vmem>>, vector<1x128xf32>
    %12 = vector.broadcast %11 : vector<1x128xf32> to vector<64x128xf32>
    %13 = arith.addf %10, %12 : vector<64x128xf32>
    %cst_11 = arith.constant 0.000000e+00 : f32
    %14 = vector.broadcast %cst_11 : f32 to vector<64x128xf32>
    %15 = arith.maximumf %13, %14 : vector<64x128xf32>
    %16 = arith.truncf %15 : vector<64x128xf32> to vector<64x128xbf16>
    %c0_12 = arith.constant 0 : index
    %c0_13 = arith.constant 0 : index
    %17 = vector.load %arg6[%c0_12, %c0_13] : memref<128x128xbf16, #tpu.memory_space<vmem>>, vector<128x128xbf16>
    %cst_14 = arith.constant dense<0.000000e+00> : vector<64x128xf32>
    %18 = tpu.matmul %16, %17, %cst_14 {dimension_numbers = #tpu.dot_dimension_numbers<[1], [0], [0], [1], [0, 0, 1, 1], [], []>} : vector<64x128xbf16>, vector<128x128xbf16>, vector<64x128xf32> -> vector<64x128xf32>
    %c0_15 = arith.constant 0 : index
    %c0_16 = arith.constant 0 : index
    %19 = vector.load %arg7[%c0_15, %c0_16] : memref<1x128xf32, #tpu.memory_space<vmem>>, vector<1x128xf32>
    %20 = vector.broadcast %19 : vector<1x128xf32> to vector<64x128xf32>
    %21 = arith.addf %18, %20 : vector<64x128xf32>
    %c0_17 = arith.constant 0 : index
    %c0_18 = arith.constant 0 : index
    %22 = vector.load %arg8[%c0_17, %c0_18] : memref<64x128xf32, #tpu.memory_space<vmem>>, vector<64x128xf32>
    tpu.vector_store %arg8[%c0_17, %c0_18], %21 {strides = array<i32>} : memref<64x128xf32, #tpu.memory_space<vmem>>, vector<64x128xf32>,
    return
  }
  func.func @transform_0(%arg0: i32) -> (i32, i32) {
    %c0_i32 = arith.constant 0 : i32
    %c0_i32_0 = arith.constant 0 : i32
    return %arg0, %c0_i32 : i32, i32
  }
  func.func @transform_1(%arg0: i32) -> (i32, i32) {
    %c0_i32 = arith.constant 0 : i32
    %c0_i32_0 = arith.constant 0 : i32
    %c0_i32_1 = arith.constant 0 : i32
    return %c0_i32, %c0_i32_0 : i32, i32
  }
  func.func @transform_2(%arg0: i32) -> (i32, i32) {
    %c0_i32 = arith.constant 0 : i32
    %c0_i32_0 = arith.constant 0 : i32
    %c0_i32_1 = arith.constant 0 : i32
    return %c0_i32, %c0_i32_0 : i32, i32
  }
  func.func @transform_3(%arg0: i32) -> (i32, i32) {
    %c0_i32 = arith.constant 0 : i32
    %c0_i32_0 = arith.constant 0 : i32
    %c0_i32_1 = arith.constant 0 : i32
    return %c0_i32, %c0_i32_0 : i32, i32
  }
  func.func @transform_4(%arg0: i32) -> (i32, i32) {
    %c0_i32 = arith.constant 0 : i32
    %c0_i32_0 = arith.constant 0 : i32
    %c0_i32_1 = arith.constant 0 : i32
    return %c0_i32, %c0_i32_0 : i32, i32
  }
  func.func @transform_5(%arg0: i32) -> (i32, i32) {
    %c0_i32 = arith.constant 0 : i32
    %c0_i32_0 = arith.constant 0 : i32
    %c0_i32_1 = arith.constant 0 : i32
    return %c0_i32, %c0_i32_0 : i32, i32
  }
  func.func @transform_6(%arg0: i32) -> (i32, i32) {
    %c0_i32 = arith.constant 0 : i32
    %c0_i32_0 = arith.constant 0 : i32
    %c0_i32_1 = arith.constant 0 : i32
    return %c0_i32, %c0_i32_0 : i32, i32
  }
  func.func @transform_7(%arg0: i32) -> (i32, i32) {
    %c0_i32 = arith.constant 0 : i32
    %c0_i32_0 = arith.constant 0 : i32
    return %arg0, %c0_i32 : i32, i32
  }
}

</mosaic_0001>

<bundles_post_ra>
// kernel: mlp_forward.1
= control target key start
LH: loop header
LB: loop body
LE: loop exit
PB: predicated region body
PF: predicated region fallthrough
CT: control target
= control target key end

     0   :  { %12 = vsyncpa [#allocation3], 0  ;;  %s1072_s0 = inlined_call_operand.vmem [shape: bf16[64,128], index: 0, kind: input, shape index: {}]   ;;  %s1073_s1 = inlined_call_operand.vmem [shape: bf16[128,256], index: 1, kind: input, shape index: {}]   ;;  %s1074_s2 = inlined_call_operand.vmem [shape: f32[1,256], index: 2, kind: input, shape index: {}]   ;;  %s1075_s3 = inlined_call_operand.hbm [shape: bf16[256,128], index: 3, kind: input, shape index: {}]   ;;  %s1076_s4 = inlined_call_operand.vmem [shape: f32[1,128], index: 4, kind: input, shape index: {}]   ;;  %s1077_s5 = inlined_call_operand.hbm [shape: bf16[128,128], index: 5, kind: input, shape index: {}]   ;;  %s1078_s6 = inlined_call_operand.vmem [shape: f32[1,128], index: 6, kind: input, shape index: {}]   ;;  %s1079_s7 = inlined_call_operand.vmem [shape: f32[64,128], index: 7, kind: output, shape index: {}]  }
   0x1   :  { %s24_s26 = sshll.u32 %s1075_s3, 4  ;;  %s25_s26 = int_to_ptr.hbm [resolvable:$true] %s24_s26 }
   0x2   :  { %13 = vsyncpa [#allocation5], 0  ;;  %s881_s27 = smov [#allocation2]   ;;  %s39_s8 = sshll.u32 %s1077_s5, 4  ;;  %s40_s8 = int_to_ptr.hbm [resolvable:$true] %s39_s8 }
   0x3   :  { %s26_s28 = sshll.u32 %s881_s27, 4  ;;  %s882_s9 = smov 64   ;;  %s27_s28 = int_to_ptr.vmem [resolvable:$true] %s26_s28 }
   0x4   :  { %s883_s10 = smov 4   ;;  %s884_s11 = smov [#allocation4]  }
   0x5   :  { %32 = dma.hbm_to_vmem [thread:$0]  %s25_s26, 2048, %s27_s28, [#allocation3], %s882_s9, %s882_s9, %s883_s10  }
   0x6   :  { %s41_s12 = sshll.u32 %s884_s11, 4  ;;  %s42_s12 = int_to_ptr.vmem [resolvable:$true] %s41_s12 }
   0x7   :  { %47 = dma.hbm_to_vmem [thread:$0]  %s40_s8, 1024, %s42_s12, [#allocation5], %s882_s9, %s882_s9, %s883_s10  }
   0x8   :  { %877 = dma.done.wait [#allocation3], 2048  }
   0x9   :  { %878 = vsyncadd [#allocation3], 4294965248 }
   0xa   :  { %879 = dma.done.wait [#allocation5], 1024  }
   0xb   :  { %880 = vsyncadd [#allocation5], 4294966272  ;;  %v661_v0 = vld [vmem:[%s1073_s1 + $0x70] sm:$0xf]  ;;  %v782_v1 = vld [vmem:[%s1073_s1 + $0x74] sm:$0xf0] }
   0xc   :  { %v653_v2 = vld [vmem:[%s1073_s1 + $0x60] sm:$0xf]  ;;  %v662_v3 = vor.u32 %v782_v1, %v661_v0  ;;  %v780_v4 = vld [vmem:[%s1073_s1 + $0x64] sm:$0xf0]  ;;  %v645_v6 = vld [vmem:[%s1073_s1 + $0x50] sm:$0xf] }
   0xd   :  { %v654_v5 = vor.u32 %v780_v4, %v653_v2  ;;  %v778_v7 = vld [vmem:[%s1073_s1 + $0x54] sm:$0xf0]  ;;  %v637_v9 = vld [vmem:[%s1073_s1 + $0x40] sm:$0xf]  ;;  %v776_v10 = vld [vmem:[%s1073_s1 + $0x44] sm:$0xf0] }
   0xe   :  { %192 = vmatpush.bf16.msra.mxu0 %v662_v3  ;;  %807 = vmatpush.bf16.msra.mxu1 %v662_v3  ;;  %v646_v8 = vor.u32 %v778_v7, %v645_v6  ;;  %v638_v11 = vor.u32 %v776_v10, %v637_v9  ;;  %v629_v12 = vld [vmem:[%s1073_s1 + $0x30] sm:$0xf]  ;;  %v774_v13 = vld [vmem:[%s1073_s1 + $0x34] sm:$0xf0]  ;;  %v621_v15 = vld [vmem:[%s1073_s1 + $0x20] sm:$0xf] }
   0xf   :  { %v630_v14 = vor.u32 %v774_v13, %v629_v12  ;;  %v772_v16 = vld [vmem:[%s1073_s1 + $0x24] sm:$0xf0]  ;;  %v613_v18 = vld [vmem:[%s1073_s1 + $0x10] sm:$0xf]  ;;  %v770_v19 = vld [vmem:[%s1073_s1 + $0x14] sm:$0xf0] }
  0x10   :  { %v622_v17 = vor.u32 %v772_v16, %v621_v15  ;;  %v614_v20 = vor.u32 %v770_v19, %v613_v18  ;;  %v605_v21 = vld [vmem:[%s1073_s1] sm:$0xf]  ;;  %v768_v22 = vld [vmem:[%s1073_s1 + $0x4] sm:$0xf0]  ;;  %v781_v23 = vld [vmem:[%s1073_s1 + $0x74] sm:$0xf] }
  0x11   :  { %v663_v24 = vld [vmem:[%s1073_s1 + $0x78] sm:$0xf0]  ;;  %v606_v25 = vor.u32 %v768_v22, %v605_v21  ;;  %v779_v27 = vld [vmem:[%s1073_s1 + $0x64] sm:$0xf]  ;;  %v655_v28 = vld [vmem:[%s1073_s1 + $0x68] sm:$0xf0] }
  0x12   :  { %193 = vmatpush.bf16.msra.mxu0 %v654_v5  ;;  %808 = vmatpush.bf16.msra.mxu1 %v654_v5  ;;  %v666_v26 = vor.u32 %v781_v23, %v663_v24  ;;  %v763_v29 = vld [vmem:[%s1072_s0] sm:$0xff]  ;;  %v765_v30 = vld [vmem:[%s1072_s0 + $0x10] sm:$0xff]  ;;  %v658_v31 = vor.u32 %v779_v27, %v655_v28  ;;  %v647_v33 = vld [vmem:[%s1073_s1 + $0x58] sm:$0xf0] }
  0x13   :  { %v777_v32 = vld [vmem:[%s1073_s1 + $0x54] sm:$0xf]  ;;  %v775_v35 = vld [vmem:[%s1073_s1 + $0x44] sm:$0xf]  ;;  %v639_v36 = vld [vmem:[%s1073_s1 + $0x48] sm:$0xf0] }
  0x14   :  { %v650_v34 = vor.u32 %v777_v32, %v647_v33  ;;  %v642_v37 = vor.u32 %v775_v35, %v639_v36  ;;  %v773_v38 = vld [vmem:[%s1073_s1 + $0x34] sm:$0xf]  ;;  %v631_v39 = vld [vmem:[%s1073_s1 + $0x38] sm:$0xf0]  ;;  %v771_v41 = vld [vmem:[%s1073_s1 + $0x24] sm:$0xf] }
  0x15   :  { %v634_v40 = vor.u32 %v773_v38, %v631_v39  ;;  %v623_v42 = vld [vmem:[%s1073_s1 + $0x28] sm:$0xf0]  ;;  %v766_v44 = vld [vmem:[%s1072_s0 + $0x18] sm:$0xff]  ;;  %v769_v46 = vld [vmem:[%s1073_s1 + $0x14] sm:$0xf] }
  0x16   :  { %194 = vmatpush.bf16.msra.mxu0 %v646_v8  ;;  %809 = vmatpush.bf16.msra.mxu1 %v646_v8  ;;  %v764_v43 = vld [vmem:[%s1072_s0 + $0x8] sm:$0xff]  ;;  %v626_v45 = vor.u32 %v771_v41, %v623_v42  ;;  %v615_v47 = vld [vmem:[%s1073_s1 + $0x18] sm:$0xf0]  ;;  %v767_v49 = vld [vmem:[%s1073_s1 + $0x4] sm:$0xf] }
  0x17   :  { %v618_v48 = vor.u32 %v769_v46, %v615_v47  ;;  %v607_v50 = vld [vmem:[%s1073_s1 + $0x8] sm:$0xf0]  ;;  %v790_v52 = vld [vmem:[#allocation2 + $0x38] sm:$0xff]  ;;  %v789_v53 = vld [vmem:[#allocation2 + $0x30] sm:$0xff] }
  0x18   :  { %v610_v51 = vor.u32 %v767_v49, %v607_v50  ;;  %406 = vmatpush.bf16.msra.mxu2 %v790_v52  ;;  %v788_v54 = vld [vmem:[#allocation2 + $0x28] sm:$0xff]  ;;  %v787_v55 = vld [vmem:[#allocation2 + $0x20] sm:$0xff]  ;;  %v786_v56 = vld [vmem:[#allocation2 + $0x18] sm:$0xff] }
  0x19   :  { %v785_v57 = vld [vmem:[#allocation2 + $0x10] sm:$0xff]  ;;  %v784_v58 = vld [vmem:[#allocation2 + $0x8] sm:$0xff]  ;;  %v783_v59 = vld [vmem:[#allocation2] sm:$0xff] }
  0x1a   :  { %195 = vmatpush.bf16.msra.mxu0 %v638_v11  ;;  %810 = vmatpush.bf16.msra.mxu1 %v638_v11  ;;  %v798_v60 = vld [vmem:[#allocation2 + $0x78] sm:$0xff]  ;;  %v797_v61 = vld [vmem:[#allocation2 + $0x70] sm:$0xff]  ;;  %v796_v62 = vld [vmem:[#allocation2 + $0x68] sm:$0xff] }
  0x1b   :  { %435 = vmatpush.bf16.msra.mxu3 %v798_v60  ;;  %v795_v63 = vld [vmem:[#allocation2 + $0x60] sm:$0xff]  ;;  %v794_v0 = vld [vmem:[#allocation2 + $0x58] sm:$0xff]  ;;  %v793_v4 = vld [vmem:[#allocation2 + $0x50] sm:$0xff] }
  0x1c   :  { %407 = vmatpush.bf16.msra.mxu2 %v789_v53  ;;  %v82_v1 = vld [vmem:[%s1074_s2] sm:$0x3]  ;;  %v792_v7 = vld [vmem:[#allocation2 + $0x48] sm:$0xff] }
  0x1d   :  { %v84_v5 = vperm.slane %v82_v1, 0  ;;  %v791_v12 = vld [vmem:[#allocation2 + $0x40] sm:$0xff] }
  0x1e   :  { %196 = vmatpush.bf16.msra.mxu0 %v630_v14  ;;  %811 = vmatpush.bf16.msra.mxu1 %v630_v14 }
  0x1f   :  { %436 = vmatpush.bf16.msra.mxu3 %v797_v61 }
  0x20   :  { %408 = vmatpush.bf16.msra.mxu2 %v788_v54 }
  0x22   :  { %197 = vmatpush.bf16.msra.mxu0 %v622_v17  ;;  %812 = vmatpush.bf16.msra.mxu1 %v622_v17 }
  0x23   :  { %437 = vmatpush.bf16.msra.mxu3 %v796_v62 }
  0x24   :  { %409 = vmatpush.bf16.msra.mxu2 %v787_v55 }
  0x26   :  { %198 = vmatpush.bf16.msra.mxu0 %v614_v20  ;;  %813 = vmatpush.bf16.msra.mxu1 %v614_v20 }
  0x27   :  { %438 = vmatpush.bf16.msra.mxu3 %v795_v63  ;;  %v806_v63 = vld [vmem:[#allocation4 + $0x38] sm:$0xff] }
  0x28   :  { %410 = vmatpush.bf16.msra.mxu2 %v786_v56 }
  0x2a   :  { %199 = vmatpush.bf16.msra.mxu0 %v606_v25  ;;  %814 = vmatpush.bf16.msra.mxu1 %v606_v25  ;;  %v85_v25 = vperm.slane %v82_v1, 1  ;;  %v804_v1 = vld [vmem:[#allocation4 + $0x28] sm:$0xff] }
  0x2b   :  { %439 = vmatpush.bf16.msra.mxu3 %v794_v0  ;;  %v805_v0 = vld [vmem:[#allocation4 + $0x30] sm:$0xff] }
  0x2c   :  { %411 = vmatpush.bf16.msra.mxu2 %v785_v57 }
  0x2d   :  { %200 = vmatmul.bf16.vlgmr.msra.gmra.mxu0 %v763_v29  ;;  %210 = vmatmul.bf16.vlgmr.msra.gmra.mxu1 %v765_v30 }
  0x2e   :  { %221 = vmatpush.bf16.msrb.mxu1 %v666_v26  ;;  %544 = vmatpush.bf16.msrb.mxu0 %v806_v63 }
  0x2f   :  { %440 = vmatpush.bf16.msra.mxu3 %v793_v4  ;;  %v801_v4 = vld [vmem:[#allocation4 + $0x10] sm:$0xff] }
  0x30   :  { %412 = vmatpush.bf16.msra.mxu2 %v784_v58 }
  0x32   :  { %222 = vmatpush.bf16.msrb.mxu1 %v658_v31  ;;  %545 = vmatpush.bf16.msrb.mxu0 %v805_v0 }
  0x33   :  { %441 = vmatpush.bf16.msra.mxu3 %v792_v7 }
  0x34   :  { %413 = vmatpush.bf16.msra.mxu2 %v783_v59 }
  0x36   :  { %223 = vmatpush.bf16.msrb.mxu1 %v650_v34  ;;  %546 = vmatpush.bf16.msrb.mxu0 %v804_v1 }
  0x37   :  { %442 = vmatpush.bf16.msra.mxu3 %v791_v12 }
  0x38   :  { %815 = vmatpush.bf16.msrb.mxu2 %v806_v63 }
  0x3a   :  { %224 = vmatpush.bf16.msrb.mxu1 %v642_v37 }
  0x3c   :  { %816 = vmatpush.bf16.msrb.mxu2 %v805_v0 }
  0x3d   :  { %205 = vmatmul.bf16.gmra.mxu0 %v764_v43  ;;  %215 = vmatmul.bf16.gmra.mxu1 %v766_v44 }
  0x3e   :  { %225 = vmatpush.bf16.msrb.mxu1 %v634_v40 }
  0x40   :  { %817 = vmatpush.bf16.msrb.mxu2 %v804_v1 }
  0x42   :  { %226 = vmatpush.bf16.msrb.mxu1 %v626_v45 }
  0x46   :  { %227 = vmatpush.bf16.msrb.mxu1 %v618_v48 }
  0x4a   :  { %228 = vmatpush.bf16.msrb.mxu1 %v610_v51 }
  0x4d   :  { %229 = vmatmul.bf16.vlgmr.msrb.gmra.mxu1 %v763_v29 }
  0x5d   :  { %234 = vmatmul.bf16.gmra.mxu1 %v764_v43 }
  0x6d   :  { %239 = vmatmul.bf16.gmra.mxu1 %v765_v30 }
  0x7d   :  { %244 = vmatmul.bf16.gmra.mxu1 %v766_v44 }
  0xaa   :  { %v201_v2 = vpop.f32.mrf.mxu0  ;;  %v211_v3 = vpop.f32.mrf.mxu1 }
  0xab   :  { %v202_v6 = vadd.f32 %v201_v2, %v84_v5  ;;  %v212_v27 = vadd.f32 %v211_v3, %v84_v5  ;;  %v803_v2 = vld [vmem:[#allocation4 + $0x20] sm:$0xff]  ;;  %v802_v3 = vld [vmem:[#allocation4 + $0x18] sm:$0xff] }
  0xac   :  { %547 = vmatpush.bf16.msrb.mxu0 %v803_v2  ;;  %818 = vmatpush.bf16.msrb.mxu2 %v803_v2 }
  0xad   :  { %v250_v10 = vmax.f32 %v202_v6, 0.0  ;;  %v258_v32 = vmax.f32 %v212_v27, 0.0  ;;  %v799_v6 = vld [vmem:[#allocation4] sm:$0xff] }
  0xb0   :  { %548 = vmatpush.bf16.msrb.mxu0 %v802_v3  ;;  %819 = vmatpush.bf16.msrb.mxu2 %v802_v3 }
  0xb2   :  { %v203_v8 = vpop.f32.mrf.mxu0  ;;  %v213_v9 = vpop.f32.mrf.mxu1 }
  0xb3   :  { %v204_v11 = vadd.f32 %v203_v8, %v84_v5  ;;  %v214_v26 = vadd.f32 %v213_v9, %v84_v5 }
  0xb4   :  { %549 = vmatpush.bf16.msrb.mxu0 %v801_v4  ;;  %820 = vmatpush.bf16.msrb.mxu2 %v801_v4 }
  0xb5   :  { %v252_v13 = vmax.f32 %v204_v11, 0.0  ;;  %v260_v30 = vmax.f32 %v214_v26, 0.0 }
  0xb7   :  { %v266_v14 = vpack.c.bf16 %v252_v13, %v250_v10  ;;  %v270_v35 = vpack.c.bf16 %v260_v30, %v258_v32  ;;  %v827_v10 = vld [vmem:[%s1076_s4] ss:$0 sm:$0xff] }
  0xb9   :  { %414 = vmatmul.bf16.vlgmr.msra.gmra.mxu2 %v266_v14 }
  0xba   :  { %v206_v15 = vpop.f32.mrf.mxu0  ;;  %v216_v16 = vpop.f32.mrf.mxu1 }
  0xbb   :  { %v207_v17 = vadd.f32 %v206_v15, %v84_v5  ;;  %v217_v39 = vadd.f32 %v216_v16, %v84_v5 }
  0xbd   :  { %v254_v20 = vmax.f32 %v207_v17, 0.0  ;;  %v262_v44 = vmax.f32 %v217_v39, 0.0 }
  0xc2   :  { %v208_v18 = vpop.f32.mrf.mxu0  ;;  %v218_v19 = vpop.f32.mrf.mxu1 }
  0xc3   :  { %v209_v21 = vadd.f32 %v208_v18, %v84_v5  ;;  %v219_v38 = vadd.f32 %v218_v19, %v84_v5  ;;  %v800_v5 = vld [vmem:[#allocation4 + $0x8] sm:$0xff] }
  0xc4   :  { %550 = vmatpush.bf16.msrb.mxu0 %v800_v5  ;;  %821 = vmatpush.bf16.msrb.mxu2 %v800_v5 }
  0xc5   :  { %v256_v22 = vmax.f32 %v209_v21, 0.0  ;;  %v264_v42 = vmax.f32 %v219_v38, 0.0 }
  0xc7   :  { %v268_v23 = vpack.c.bf16 %v256_v22, %v254_v20  ;;  %v272_v47 = vpack.c.bf16 %v264_v42, %v262_v44 }
  0xc8   :  { %551 = vmatpush.bf16.msrb.mxu0 %v799_v6  ;;  %822 = vmatpush.bf16.msrb.mxu2 %v799_v6 }
  0xc9   :  { %419 = vmatmul.bf16.gmra.mxu2 %v268_v23 }
  0xca   :  { %v230_v24 = vpop.f32.mrf.mxu1 }
  0xcb   :  { %v231_v28 = vadd.f32 %v230_v24, %v85_v25 }
  0xcd   :  { %v251_v33 = vmax.f32 %v231_v28, 0.0 }
  0xd2   :  { %v232_v29 = vpop.f32.mrf.mxu1 }
  0xd3   :  { %v233_v31 = vadd.f32 %v232_v29, %v85_v25 }
  0xd5   :  { %v253_v34 = vmax.f32 %v233_v31, 0.0 }
  0xd7   :  { %v267_v36 = vpack.c.bf16 %v253_v34, %v251_v33 }
  0xd9   :  { %424 = vmatmul.bf16.gmra.mxu2 %v270_v35  ;;  %443 = vmatmul.bf16.vlgmr.msra.gmra.mxu3 %v267_v36 }
  0xda   :  { %v235_v37 = vpop.f32.mrf.mxu1 }
  0xdb   :  { %v236_v40 = vadd.f32 %v235_v37, %v85_v25 }
  0xdd   :  { %v255_v45 = vmax.f32 %v236_v40, 0.0 }
  0xe2   :  { %v237_v41 = vpop.f32.mrf.mxu1 }
  0xe3   :  { %v238_v43 = vadd.f32 %v237_v41, %v85_v25 }
  0xe5   :  { %v257_v46 = vmax.f32 %v238_v43, 0.0 }
  0xe7   :  { %v269_v48 = vpack.c.bf16 %v257_v46, %v255_v45 }
  0xe9   :  { %429 = vmatmul.bf16.gmra.mxu2 %v272_v47  ;;  %448 = vmatmul.bf16.gmra.mxu3 %v269_v48 }
  0xea   :  { %v240_v49 = vpop.f32.mrf.mxu1 }
  0xeb   :  { %v241_v50 = vadd.f32 %v240_v49, %v85_v25 }
  0xed   :  { %v259_v53 = vmax.f32 %v241_v50, 0.0 }
  0xf2   :  { %v242_v51 = vpop.f32.mrf.mxu1 }
  0xf3   :  { %v243_v52 = vadd.f32 %v242_v51, %v85_v25 }
  0xf5   :  { %v261_v54 = vmax.f32 %v243_v52, 0.0  ;;  %v828_v52 = vld [vmem:[%s1078_s6] ss:$0 sm:$0xff] }
  0xf7   :  { %v271_v55 = vpack.c.bf16 %v261_v54, %v259_v53 }
  0xf9   :  { %453 = vmatmul.bf16.gmra.mxu3 %v271_v55 }
  0xfa   :  { %v245_v56 = vpop.f32.mrf.mxu1 }
  0xfb   :  { %v246_v57 = vadd.f32 %v245_v56, %v85_v25 }
  0xfd   :  { %v263_v60 = vmax.f32 %v246_v57, 0.0 }
 0x102   :  { %v247_v58 = vpop.f32.mrf.mxu1 }
 0x103   :  { %v248_v59 = vadd.f32 %v247_v58, %v85_v25 }
 0x105   :  { %v265_v61 = vmax.f32 %v248_v59, 0.0 }
 0x107   :  { %v273_v62 = vpack.c.bf16 %v265_v61, %v263_v60 }
 0x109   :  { %458 = vmatmul.bf16.gmra.mxu3 %v273_v62 }
 0x13c   :  { %v415_v7 = vpop.f32.mrf.mxu2 }
 0x13d   :  { %v416_v12 = vadd.f32 %v827_v10, %v415_v7 }
 0x144   :  { %v417_v8 = vpop.f32.mrf.mxu2 }
 0x145   :  { %v418_v13 = vadd.f32 %v827_v10, %v417_v8 }
 0x14c   :  { %v420_v11 = vpop.f32.mrf.mxu2 }
 0x14d   :  { %v421_v22 = vadd.f32 %v827_v10, %v420_v11 }
 0x154   :  { %v422_v19 = vpop.f32.mrf.mxu2 }
 0x155   :  { %v423_v24 = vadd.f32 %v827_v10, %v422_v19 }
 0x15c   :  { %v444_v9 = vpop.f32.mrf.mxu3  ;;  %v425_v23 = vpop.f32.mrf.mxu2 }
 0x15d   :  { %v445_v14 = vadd.f32 %v444_v9, %v416_v12  ;;  %v426_v33 = vadd.f32 %v827_v10, %v425_v23 }
 0x15f   :  { %v464_v17 = vmax.f32 %v445_v14, 0.0 }
 0x164   :  { %v446_v15 = vpop.f32.mrf.mxu3  ;;  %v427_v31 = vpop.f32.mrf.mxu2 }
 0x165   :  { %v447_v16 = vadd.f32 %v446_v15, %v418_v13  ;;  %v428_v34 = vadd.f32 %v827_v10, %v427_v31 }
 0x167   :  { %v465_v18 = vmax.f32 %v447_v16, 0.0 }
 0x169   :  { %v472_v20 = vpack.c.bf16 %v465_v18, %v464_v17 }
 0x16b   :  { %552 = vmatmul.bf16.vlgmr.msrb.gmra.mxu0 %v472_v20 }
 0x16c   :  { %v449_v21 = vpop.f32.mrf.mxu3  ;;  %v430_v38 = vpop.f32.mrf.mxu2 }
 0x16d   :  { %v450_v25 = vadd.f32 %v449_v21, %v421_v22  ;;  %v431_v44 = vadd.f32 %v827_v10, %v430_v38 }
 0x16f   :  { %v466_v28 = vmax.f32 %v450_v25, 0.0 }
 0x174   :  { %v451_v26 = vpop.f32.mrf.mxu3  ;;  %v432_v43 = vpop.f32.mrf.mxu2 }
 0x175   :  { %v452_v27 = vadd.f32 %v451_v26, %v423_v24  ;;  %v433_v45 = vadd.f32 %v827_v10, %v432_v43 }
 0x177   :  { %v467_v29 = vmax.f32 %v452_v27, 0.0 }
 0x179   :  { %v473_v30 = vpack.c.bf16 %v467_v29, %v466_v28 }
 0x17b   :  { %557 = vmatmul.bf16.gmra.mxu0 %v473_v30 }
 0x17c   :  { %v454_v32 = vpop.f32.mrf.mxu3 }
 0x17d   :  { %v455_v35 = vadd.f32 %v454_v32, %v426_v33 }
 0x17f   :  { %v468_v39 = vmax.f32 %v455_v35, 0.0 }
 0x184   :  { %v456_v36 = vpop.f32.mrf.mxu3 }
 0x185   :  { %v457_v37 = vadd.f32 %v456_v36, %v428_v34 }
 0x187   :  { %v469_v40 = vmax.f32 %v457_v37, 0.0 }
 0x189   :  { %v474_v41 = vpack.c.bf16 %v469_v40, %v468_v39 }
 0x18b   :  { %562 = vmatmul.bf16.gmra.mxu0 %v474_v41 }
 0x18c   :  { %v459_v42 = vpop.f32.mrf.mxu3 }
 0x18d   :  { %v460_v46 = vadd.f32 %v459_v42, %v431_v44 }
 0x18f   :  { %v470_v49 = vmax.f32 %v460_v46, 0.0 }
 0x194   :  { %v461_v47 = vpop.f32.mrf.mxu3 }
 0x195   :  { %v462_v48 = vadd.f32 %v461_v47, %v433_v45 }
 0x197   :  { %v471_v50 = vmax.f32 %v462_v48, 0.0 }
 0x199   :  { %v475_v51 = vpack.c.bf16 %v471_v50, %v470_v49 }
 0x19b   :  { %567 = vmatmul.bf16.vlgmr.msrb.gmra.mxu2 %v475_v51 }
 0x1e8   :  { %v553_v53 = vpop.f32.mrf.mxu0 }
 0x1e9   :  { %v554_v54 = vadd.f32 %v828_v52, %v553_v53 }
 0x1eb   :  { %573 = vst [vmem:[%s1079_s7] sm:$0xff] %v554_v54 }
 0x1f0   :  { %v555_v55 = vpop.f32.mrf.mxu0 }
 0x1f1   :  { %v556_v56 = vadd.f32 %v828_v52, %v555_v55 }
 0x1f3   :  { %574 = vst [vmem:[%s1079_s7 + $0x8] sm:$0xff] %v556_v56 }
 0x1f8   :  { %v558_v57 = vpop.f32.mrf.mxu0 }
 0x1f9   :  { %v559_v58 = vadd.f32 %v828_v52, %v558_v57 }
 0x1fb   :  { %575 = vst [vmem:[%s1079_s7 + $0x10] sm:$0xff] %v559_v58 }
 0x200   :  { %v560_v59 = vpop.f32.mrf.mxu0 }
 0x201   :  { %v561_v60 = vadd.f32 %v828_v52, %v560_v59 }
 0x203   :  { %576 = vst [vmem:[%s1079_s7 + $0x18] sm:$0xff] %v561_v60 }
 0x208   :  { %v563_v61 = vpop.f32.mrf.mxu0 }
 0x209   :  { %v564_v62 = vadd.f32 %v828_v52, %v563_v61 }
 0x20b   :  { %577 = vst [vmem:[%s1079_s7 + $0x20] sm:$0xff] %v564_v62 }
 0x210   :  { %v565_v63 = vpop.f32.mrf.mxu0 }
 0x211   :  { %v566_v0 = vadd.f32 %v828_v52, %v565_v63 }
 0x213   :  { %578 = vst [vmem:[%s1079_s7 + $0x28] sm:$0xff] %v566_v0 }
 0x21e   :  { %v568_v1 = vpop.f32.mrf.mxu2 }
 0x21f   :  { %v569_v2 = vadd.f32 %v828_v52, %v568_v1 }
 0x221   :  { %579 = vst [vmem:[%s1079_s7 + $0x30] sm:$0xff] %v569_v2 }
 0x226   :  { %v570_v3 = vpop.f32.mrf.mxu2 }
 0x227   :  { %v571_v4 = vadd.f32 %v828_v52, %v570_v3 }
 0x229   :  { %580 = vst [vmem:[%s1079_s7 + $0x38] sm:$0xff] %v571_v4 }
 0x22a   :  { %585 = vsyncpa [#allocation3], 1 }
 0x22b   :  { %586 = vsyncpa [#allocation5], 1 }

</bundles_post_ra>
